<compile_context>
chip_gen: v7x
topology: tpu7x:2x2x1
jax: 0.10.0
libtpu: 0.0.40
codegen_flags: <defaults>
</compile_context>

<pallas_src>
import jax
import jax.numpy as jnp
from jax.experimental import pallas as pl
from jax.experimental.pallas import tpu as pltpu


def critic_kernel(s_ref, a_ref, w1s_ref, w1a_ref, pk_ref, w2_ref, bq_ref, out_ref):
    # Static dims recovered from ref shapes (no partial/closure needed).
    fc1 = w2_ref.shape[0]
    fc2 = w2_ref.shape[1]

    s = s_ref[...]                                                   # (B, n_inputs)
    a = a_ref[...]                                                   # (B, n_actions)

    # fc1 on the split weight: equivalent to concat([s, a]) @ w1 (+ b1),
    # without materializing the concatenated input.  b1 is omitted because the
    # training-mode BN mean subtraction below cancels any per-feature constant.
    h1 = (jnp.dot(s, w1s_ref[...], preferred_element_type=jnp.float32)
          + jnp.dot(a, w1a_ref[...], preferred_element_type=jnp.float32))

    # Packed row-vector parameters: rows are [gamma, beta, b2, wq].
    g1 = pk_ref[0:1, 0:fc1]
    be1 = pk_ref[1:2, 0:fc1]
    b2 = pk_ref[2:3, 0:fc2]
    wq = pk_ref[3:4, 0:fc2]

    # BatchNorm1d (training mode: per-batch mean / biased variance, eps=1e-5),
    # affine folded into a single scale/shift on the (1, fc1) row.
    mean = jnp.mean(h1, axis=0, keepdims=True)
    diff = h1 - mean
    var = jnp.mean(diff * diff, axis=0, keepdims=True)
    scale = g1 * jax.lax.rsqrt(var + 1e-5)
    shift = be1 - mean * scale
    h1 = jnp.maximum(h1 * scale + shift, 0.0)                       # BN + relu

    # fc2 + relu
    h2 = jnp.dot(h1, w2_ref[...], preferred_element_type=jnp.float32) + b2
    h2 = jnp.maximum(h2, 0.0)

    # q head: (B, fc2) * (1, fc2) -> lane reduce on VPU/XLU instead of an
    # N=1 MXU matmul.  bq is a true scalar read from SMEM.
    q = jnp.sum(h2 * wq, axis=1, keepdims=True) + bq_ref[0, 0]
    out_ref[...] = q


def pack_params(params):
    """One-time repack of the parameter pytree into kernel arguments.

    * g1 / be1 / b2 / wq -> one (4, FMAX) f32 slab (single DMA).
    * bq                 -> (1, 1) f32 scalar destined for SMEM.
    * b1 is dropped (mathematically dead under training-mode BatchNorm).
    """
    fc1 = params["w1s"].shape[1]
    fc2 = params["w2"].shape[1]
    fmax = max(fc1, fc2)

    def row(v):
        v = jnp.asarray(v, jnp.float32).reshape(1, -1)
        return jnp.pad(v, ((0, 0), (0, fmax - v.shape[1])))

    pk = jnp.concatenate(
        [row(params["g1"]), row(params["be1"]), row(params["b2"]), row(params["wq"])],
        axis=0)                                                      # (4, FMAX)
    bq = jnp.asarray(params["bq"], jnp.float32).reshape(1, 1)
    return (params["w1s"], params["w1a"], pk, params["w2"], bq)


def critic_forward(state, action, packed):
    """state: (B, n_inputs), action: (B, n_actions) -> q: (B, 1)."""
    w1s, w1a, pk, w2, bq = packed
    B, n_inputs = state.shape
    n_actions = action.shape[1]
    d_in = n_inputs + n_actions
    fc1_dims = w1s.shape[1]
    fc2_dims = w2.shape[1]

    full = lambda arr: pl.BlockSpec(arr.shape, lambda: (0,) * arr.ndim)

    in_specs = [
        full(state), full(action),                 # activations
        full(w1s), full(w1a),                      # split fc1 weight
        full(pk),                                  # packed row vectors (1 DMA)
        full(w2),                                  # fc2 weight
        pl.BlockSpec(memory_space=pltpu.MemorySpace.SMEM),   # bq scalar
    ]

    # Advisory cost so XLA can overlap this tiny custom call with neighbors.
    flops = 2 * B * (d_in * fc1_dims + fc1_dims * fc2_dims + fc2_dims)
    bytes_accessed = 4 * (
        B * d_in                                   # inputs
        + d_in * fc1_dims                          # w1
        + fc1_dims * fc2_dims                      # w2
        + 4 * max(fc1_dims, fc2_dims) + 1          # packed vectors + bq
        + B                                        # output
    )
    cost = pl.CostEstimate(flops=flops,
                           transcendentals=fc1_dims,   # rsqrt per BN feature
                           bytes_accessed=bytes_accessed)

    return pl.pallas_call(
        critic_kernel,
        out_shape=jax.ShapeDtypeStruct((B, 1), jnp.float32),
        in_specs=in_specs,
        out_specs=pl.BlockSpec((B, 1), lambda: (0, 0)),
        cost_estimate=cost,
    )(state, action, w1s, w1a, pk, w2, bq)


def init_params(key, n_inputs, n_actions, fc1_dims, fc2_dims):
    """Deterministic init mirroring _init_uniform: f = 1/sqrt(out_features)
    (PyTorch weight.size()[0] is out_features for nn.Linear); q head f=0.003.
    Weights stored as (in_features, out_features) so the kernel does x @ W."""
    d_in = n_inputs + n_actions
    ks = jax.random.split(key, 6)

    f1 = 1.0 / jnp.sqrt(jnp.float32(fc1_dims))
    w1 = jax.random.uniform(ks[0], (d_in, fc1_dims), jnp.float32, -f1, f1)
    b1 = jax.random.uniform(ks[1], (fc1_dims,), jnp.float32, -f1, f1)

    # BatchNorm1d affine params at default init (gamma=1, beta=0)
    g1 = jnp.ones((fc1_dims,), jnp.float32)
    be1 = jnp.zeros((fc1_dims,), jnp.float32)

    f2 = 1.0 / jnp.sqrt(jnp.float32(fc2_dims))
    w2 = jax.random.uniform(ks[2], (fc1_dims, fc2_dims), jnp.float32, -f2, f2)
    b2 = jax.random.uniform(ks[3], (fc2_dims,), jnp.float32, -f2, f2)

    fq = 0.003
    wq = jax.random.uniform(ks[4], (fc2_dims,), jnp.float32, -fq, fq)
    bq = jax.random.uniform(ks[5], (), jnp.float32, -fq, fq)

    return dict(w1s=w1[:n_inputs], w1a=w1[n_inputs:], b1=b1, g1=g1, be1=be1,
                w2=w2, b2=b2, wq=wq, bq=bq)


def reference_forward(state, action, params):
    """Pure-JAX reference of the PyTorch forward (INCLUDES fc1's bias b1 to
    demonstrate that dropping it in the kernel preserves the output exactly,
    since training-mode BatchNorm subtracts the batch mean)."""
    x = jnp.concatenate([state, action], axis=1)
    w1 = jnp.concatenate([params["w1s"], params["w1a"]], axis=0)
    h1 = x @ w1 + params["b1"]
    mean = jnp.mean(h1, axis=0, keepdims=True)
    var = jnp.mean((h1 - mean) ** 2, axis=0, keepdims=True)
    h1 = (h1 - mean) * jax.lax.rsqrt(var + 1e-5) * params["g1"] + params["be1"]
    h1 = jnp.maximum(h1, 0.0)
    h2 = jnp.maximum(h1 @ params["w2"] + params["b2"], 0.0)
    return h2 @ params["wq"].reshape(-1, 1) + params["bq"]


if __name__ == "__main__":
    # Small shapes consistent with the module's forward (B>1 needed for BN).
    B, n_inputs, n_actions, fc1_dims, fc2_dims = 8, 16, 4, 32, 32

    key = jax.random.PRNGKey(0)
    k_state, k_action, k_params = jax.random.split(key, 3)

    state = jax.random.normal(k_state, (B, n_inputs), jnp.float32)
    action = jax.random.normal(k_action, (B, n_actions), jnp.float32)
    params = init_params(k_params, n_inputs, n_actions, fc1_dims, fc2_dims)
    packed = pack_params(params)   # one-time repack, amortized across calls

    q = jax.block_until_ready(critic_forward(state, action, packed))

    q_ref = reference_forward(state, action, params)
    assert q.shape == (B, 1)
    assert jnp.allclose(q, q_ref, atol=1e-5, rtol=1e-5), "mismatch vs JAX reference"

    print("KERNEL_OK")
</pallas_src>

<mosaic_0001>
module attributes {stable_mosaic.version = 11 : i64} {
  func.func @critic_kernel(%arg0: memref<8x16xf32, #tpu.memory_space<vmem>>, %arg1: memref<8x4xf32, #tpu.memory_space<vmem>>, %arg2: memref<16x32xf32, #tpu.memory_space<vmem>>, %arg3: memref<4x32xf32, #tpu.memory_space<vmem>>, %arg4: memref<4x32xf32, #tpu.memory_space<vmem>>, %arg5: memref<32x32xf32, #tpu.memory_space<vmem>>, %arg6: memref<1x1xf32, #tpu.memory_space<smem>>, %arg7: memref<8x1xf32, #tpu.memory_space<vmem>>) attributes {dimension_semantics = [], scalar_prefetch = 0 : i64, scratch_operands = 0 : i64, tpu.core_type = #tpu.core_type<tc>} {
    %c0 = arith.constant 0 : index
    %c0_0 = arith.constant 0 : index
    %0 = vector.load %arg0[%c0, %c0_0] : memref<8x16xf32, #tpu.memory_space<vmem>>, vector<8x16xf32>
    %c0_1 = arith.constant 0 : index
    %c0_2 = arith.constant 0 : index
    %1 = vector.load %arg1[%c0_1, %c0_2] : memref<8x4xf32, #tpu.memory_space<vmem>>, vector<8x4xf32>
    %c0_3 = arith.constant 0 : index
    %c0_4 = arith.constant 0 : index
    %2 = vector.load %arg2[%c0_3, %c0_4] : memref<16x32xf32, #tpu.memory_space<vmem>>, vector<16x32xf32>
    %cst = arith.constant dense<0.000000e+00> : vector<8x32xf32>
    %3 = tpu.matmul %0, %2, %cst {dimension_numbers = #tpu.dot_dimension_numbers<[1], [0], [0], [1], [0, 0, 1, 1], [], []>} : vector<8x16xf32>, vector<16x32xf32>, vector<8x32xf32> -> vector<8x32xf32>
    %c0_5 = arith.constant 0 : index
    %c0_6 = arith.constant 0 : index
    %4 = vector.load %arg3[%c0_5, %c0_6] : memref<4x32xf32, #tpu.memory_space<vmem>>, vector<4x32xf32>
    %cst_7 = arith.constant dense<0.000000e+00> : vector<8x32xf32>
    %5 = tpu.matmul %1, %4, %cst_7 {dimension_numbers = #tpu.dot_dimension_numbers<[1], [0], [0], [1], [0, 0, 1, 1], [], []>} : vector<8x4xf32>, vector<4x32xf32>, vector<8x32xf32> -> vector<8x32xf32>
    %6 = arith.addf %3, %5 : vector<8x32xf32>
    %c0_8 = arith.constant 0 : index
    %c0_9 = arith.constant 0 : index
    %7 = vector.load %arg4[%c0_8, %c0_9] : memref<4x32xf32, #tpu.memory_space<vmem>>, vector<1x32xf32>
    %c1 = arith.constant 1 : index
    %c0_10 = arith.constant 0 : index
    %8 = vector.load %arg4[%c1, %c0_10] : memref<4x32xf32, #tpu.memory_space<vmem>>, vector<1x32xf32>
    %c2 = arith.constant 2 : index
    %c0_11 = arith.constant 0 : index
    %9 = vector.load %arg4[%c2, %c0_11] : memref<4x32xf32, #tpu.memory_space<vmem>>, vector<1x32xf32>
    %c3 = arith.constant 3 : index
    %c0_12 = arith.constant 0 : index
    %10 = vector.load %arg4[%c3, %c0_12] : memref<4x32xf32, #tpu.memory_space<vmem>>, vector<1x32xf32>
    %cst_13 = arith.constant dense<0.000000e+00> : vector<32xf32>
    %11 = vector.multi_reduction <add>, %6, %cst_13 [0] : vector<8x32xf32> to vector<32xf32>
    %12 = vector.shape_cast %11 : vector<32xf32> to vector<1x32xf32>
    %cst_14 = arith.constant 8.000000e+00 : f32
    %13 = vector.broadcast %cst_14 : f32 to vector<1x32xf32>
    %14 = arith.divf %12, %13 : vector<1x32xf32>
    %15 = vector.broadcast %14 : vector<1x32xf32> to vector<8x32xf32>
    %16 = arith.subf %6, %15 : vector<8x32xf32>
    %17 = arith.mulf %16, %16 : vector<8x32xf32>
    %cst_15 = arith.constant dense<0.000000e+00> : vector<32xf32>
    %18 = vector.multi_reduction <add>, %17, %cst_15 [0] : vector<8x32xf32> to vector<32xf32>
    %19 = vector.shape_cast %18 : vector<32xf32> to vector<1x32xf32>
    %cst_16 = arith.constant 8.000000e+00 : f32
    %20 = vector.broadcast %cst_16 : f32 to vector<1x32xf32>
    %21 = arith.divf %19, %20 : vector<1x32xf32>
    %cst_17 = arith.constant 9.99999974E-6 : f32
    %22 = vector.broadcast %cst_17 : f32 to vector<1x32xf32>
    %23 = arith.addf %21, %22 : vector<1x32xf32>
    %24 = math.rsqrt %23 : vector<1x32xf32>
    %25 = arith.mulf %7, %24 : vector<1x32xf32>
    %26 = arith.mulf %14, %25 : vector<1x32xf32>
    %27 = arith.subf %8, %26 : vector<1x32xf32>
    %28 = vector.broadcast %25 : vector<1x32xf32> to vector<8x32xf32>
    %29 = arith.mulf %6, %28 : vector<8x32xf32>
    %30 = vector.broadcast %27 : vector<1x32xf32> to vector<8x32xf32>
    %31 = arith.addf %29, %30 : vector<8x32xf32>
    %cst_18 = arith.constant 0.000000e+00 : f32
    %32 = vector.broadcast %cst_18 : f32 to vector<8x32xf32>
    %33 = arith.maximumf %31, %32 : vector<8x32xf32>
    %c0_19 = arith.constant 0 : index
    %c0_20 = arith.constant 0 : index
    %34 = vector.load %arg5[%c0_19, %c0_20] : memref<32x32xf32, #tpu.memory_space<vmem>>, vector<32x32xf32>
    %cst_21 = arith.constant dense<0.000000e+00> : vector<8x32xf32>
    %35 = tpu.matmul %33, %34, %cst_21 {dimension_numbers = #tpu.dot_dimension_numbers<[1], [0], [0], [1], [0, 0, 1, 1], [], []>} : vector<8x32xf32>, vector<32x32xf32>, vector<8x32xf32> -> vector<8x32xf32>
    %36 = vector.broadcast %9 : vector<1x32xf32> to vector<8x32xf32>
    %37 = arith.addf %35, %36 : vector<8x32xf32>
    %cst_22 = arith.constant 0.000000e+00 : f32
    %38 = vector.broadcast %cst_22 : f32 to vector<8x32xf32>
    %39 = arith.maximumf %37, %38 : vector<8x32xf32>
    %40 = vector.broadcast %10 : vector<1x32xf32> to vector<8x32xf32>
    %41 = arith.mulf %39, %40 : vector<8x32xf32>
    %cst_23 = arith.constant dense<0.000000e+00> : vector<8xf32>
    %42 = vector.multi_reduction <add>, %41, %cst_23 [1] : vector<8x32xf32> to vector<8xf32>
    %43 = vector.shape_cast %42 : vector<8xf32> to vector<8x1xf32>
    %c0_24 = arith.constant 0 : index
    %c0_25 = arith.constant 0 : index
    %44 = memref.load %arg6[%c0_24, %c0_25] : memref<1x1xf32, #tpu.memory_space<smem>>
    %45 = vector.broadcast %44 : f32 to vector<8x1xf32>
    %46 = arith.addf %43, %45 : vector<8x1xf32>
    %c0_26 = arith.constant 0 : index
    %c0_27 = arith.constant 0 : index
    %47 = vector.load %arg7[%c0_26, %c0_27] : memref<8x1xf32, #tpu.memory_space<vmem>>, vector<8x1xf32>
    tpu.vector_store %arg7[%c0_26, %c0_27], %46 {strides = array<i32>} : memref<8x1xf32, #tpu.memory_space<vmem>>, vector<8x1xf32>,
    return
  }
}

</mosaic_0001>

<bundles_post_ra>
// kernel: tpu_custom_call.1
= control target key start
LH: loop header
LB: loop body
LE: loop exit
PB: predicated region body
PF: predicated region fallthrough
CT: control target
= control target key end

     0   :  { %13 = vsyncpa [#allocation4], 0  ;;  %s652_s0 = inlined_call_operand.hbm [shape: f32[8,16], index: 0, kind: input, shape index: {}]   ;;  %s653_s1 = inlined_call_operand.vmem [shape: f32[8,4], index: 1, kind: input, shape index: {}]   ;;  %s654_s2 = inlined_call_operand.hbm [shape: f32[16,32], index: 2, kind: input, shape index: {}]   ;;  %s655_s3 = inlined_call_operand.hbm [shape: f32[4,32], index: 3, kind: input, shape index: {}]   ;;  %s656_s4 = inlined_call_operand.hbm [shape: f32[4,32], index: 4, kind: input, shape index: {}]   ;;  %s657_s5 = inlined_call_operand.vmem [shape: f32[32,32], index: 5, kind: input, shape index: {}]   ;;  %s658_s6 = inlined_call_operand.<no memory space> [shape: f32[1,1], index: 6, kind: input, shape index: {}]   ;;  %s659_s7 = inlined_call_operand.vmem [shape: f32[8,1], index: 7, kind: output, shape index: {}]  }
   0x1   :  { %14 = vsyncpa [#allocation6], 0 }
   0x2   :  { %15 = vsyncpa [#allocation9], 0  ;;  %s530_s24 = smov [#allocation5]   ;;  %s436_s28 = scalar_lea.hbm %s654_s2, 256 }
   0x3   :  { %s33_s25 = sshll.u32 %s530_s24, 4  ;;  %p437_p0 = scmp.ne.s32.totalorder %s654_s2, %s436_s28  ;;  %s34_s25 = int_to_ptr.vmem [resolvable:$true] %s33_s25 }
   0x4   :  { %p440_p1 = scmp.lt.u32.totalorder %s436_s28, %s654_s2 }
   0x6   :  { %p442_p2 = pnand %p440_p1, %p437_p0 }
   0x8   :  { %445 = shalt.err (!%p442_p2)
}
   0x9   :  { %s446_s10 = scalar_lea.vmem %s34_s25, 256  ;;  %p451_p4 = scmp.lt.s32.totalorder %s34_s25, %s34_s25 }
   0xa   :  { %p447_p3 = scmp.ne.s32.totalorder %s34_s25, %s446_s10  ;;  %p452_p5 = scmp.lt.s32.totalorder %s446_s10, %s446_s10 }
   0xc   :  { %p453_p6 = por %p452_p5, %p451_p4 }
   0xe   :  { %p454_p7 = pnand %p453_p6, %p447_p3 }
  0x10   :  { %457 = shalt.err (!%p454_p7)
}
  0x11   :  { %s531_s11 = smov 128   ;;  %s532_s12 = smov 8  }
  0x12   :  { %39 = dma.hbm_to_vmem [thread:$0]  %s654_s2, 256, %s34_s25, [#allocation6], %s531_s11, %s531_s11, %s532_s12  }
  0x13   :  { %s533_s15 = smov [#allocation3]   ;;  %s534_s17 = smov [#allocation7]  }
  0x14   :  { %s22_s16 = sshll.u32 %s533_s15, 4  ;;  %s46_s18 = sshll.u32 %s534_s17, 4  ;;  %s23_s16 = int_to_ptr.vmem [resolvable:$true] %s22_s16  ;;  %s47_s18 = int_to_ptr.vmem [resolvable:$true] %s46_s18 }
  0x15   :  { %s458_s21 = scalar_lea.hbm %s652_s0, 128 }
  0x16   :  { %p459_p8 = scmp.ne.s32.totalorder %s652_s0, %s458_s21  ;;  %p462_p9 = scmp.lt.u32.totalorder %s458_s21, %s652_s0 }
  0x18   :  { %p464_p10 = pnand %p462_p9, %p459_p8 }
  0x1a   :  { %467 = shalt.err (!%p464_p10)
}
  0x1b   :  { %s468_s2 = scalar_lea.vmem %s23_s16, 128  ;;  %p473_p12 = scmp.lt.s32.totalorder %s23_s16, %s23_s16 }
  0x1c   :  { %p469_p11 = scmp.ne.s32.totalorder %s23_s16, %s468_s2  ;;  %p474_p13 = scmp.lt.s32.totalorder %s468_s2, %s468_s2 }
  0x1e   :  { %p475_p0 = por %p474_p13, %p473_p12 }
  0x20   :  { %p476_p1 = pnand %p475_p0, %p469_p11 }
  0x22   :  { %479 = shalt.err (!%p476_p1)
}
  0x23   :  { %25 = dma.hbm_to_vmem [thread:$0]  %s652_s0, 128, %s23_s16, [#allocation4]  }
  0x24   :  { %s480_s30 = scalar_lea.hbm %s655_s3, 64 }
  0x25   :  { %p481_p2 = scmp.ne.s32.totalorder %s655_s3, %s480_s30  ;;  %p484_p3 = scmp.lt.u32.totalorder %s480_s30, %s655_s3 }
  0x27   :  { %p486_p4 = pnand %p484_p3, %p481_p2 }
  0x29   :  { %489 = shalt.err (!%p486_p4)
}
  0x2a   :  { %s490_s12 = scalar_lea.vmem %s47_s18, 64  ;;  %p495_p6 = scmp.lt.s32.totalorder %s47_s18, %s47_s18 }
  0x2b   :  { %p491_p5 = scmp.ne.s32.totalorder %s47_s18, %s490_s12  ;;  %p496_p7 = scmp.lt.s32.totalorder %s490_s12, %s490_s12 }
  0x2d   :  { %p497_p8 = por %p496_p7, %p495_p6 }
  0x2f   :  { %p498_p9 = pnand %p497_p8, %p491_p5 }
  0x31   :  { %501 = shalt.err (!%p498_p9)
}
  0x32   :  { %49 = dma.hbm_to_vmem [thread:$0]  %s655_s3, 64, %s47_s18, [#allocation6]  }
  0x33   :  { %s535_s14 = smov [#allocation8]   ;;  %s502_s19 = scalar_lea.hbm %s656_s4, 64 }
  0x34   :  { %s56_s15 = sshll.u32 %s535_s14, 4  ;;  %p503_p10 = scmp.ne.s32.totalorder %s656_s4, %s502_s19  ;;  %s57_s15 = int_to_ptr.vmem [resolvable:$true] %s56_s15 }
  0x35   :  { %p506_p11 = scmp.lt.u32.totalorder %s502_s19, %s656_s4 }
  0x37   :  { %p508_p12 = pnand %p506_p11, %p503_p10 }
  0x39   :  { %511 = shalt.err (!%p508_p12)
}
  0x3a   :  { %s512_s24 = scalar_lea.vmem %s57_s15, 64  ;;  %p517_p0 = scmp.lt.s32.totalorder %s57_s15, %s57_s15 }
  0x3b   :  { %p513_p13 = scmp.ne.s32.totalorder %s57_s15, %s512_s24  ;;  %p518_p1 = scmp.lt.s32.totalorder %s512_s24, %s512_s24 }
  0x3d   :  { %p519_p2 = por %p518_p1, %p517_p0 }
  0x3f   :  { %p520_p3 = pnand %p519_p2, %p513_p13 }
  0x41   :  { %523 = shalt.err (!%p520_p3)
}
  0x42   :  { %59 = dma.hbm_to_vmem [thread:$0]  %s656_s4, 64, %s57_s15, [#allocation9]  }
  0x43   :  { %524 = dma.done.wait [#allocation4], 128  }
  0x44   :  { %525 = vsyncadd [#allocation4], 4294967168 }
  0x45   :  { %526 = dma.done.wait [#allocation6], 320  }
  0x46   :  { %527 = vsyncadd [#allocation6], 4294966976 }
  0x47   :  { %528 = dma.done.wait [#allocation9], 64  }
  0x48   :  { %529 = vsyncadd [#allocation9], 4294967232  ;;  %v536_v0 = vmov 0.0   ;;  %vm537_vm0 = vmmov 0   ;;  %v538_v1 = vmov 0.0|0.0   ;;  %vm85_vm1 = vcmask 1043456  }
  0x49   :  { %391 = vmatprep.subr.mxu0 %v536_v0  ;;  %393 = vmatprep.mubr.msk.f32.mxu0 %vm537_vm0, %v536_v0  ;;  %vm81_vm2 = vcmask 31744   ;;  %v80_v2 = vld [vmem:[#allocation7] sm:$0xf]  ;;  %v77_v3 = vld [vmem:[%s653_s1] sm:$0xff]  ;;  %v78_v4 = vld [vmem:[#allocation5] sm:$0xff]  ;;  %vm159_vm3 = vcmask 130048   ;;  %v262_v35 = vlaneseq  ;;  %v364_v57 = vstv %s658_s6 }
  0x4a   :  { %417 = vmatprep.subr.bf16.mxu1 %v538_v1  ;;  %411 = vmatprep.mubr.msk.f32.mxu1 %vm537_vm0, %v536_v0  ;;  %v79_v5 = vld [vmem:[#allocation5 + $0x8] sm:$0xff]  ;;  %v76_v7 = vld [vmem:[#allocation3] sm:$0xff]  ;;  %v274_v9 = vld [vmem:[%s657_s5 + $0x8] sm:$0xff]  ;;  %vm237_vm4 = vcmask 261120   ;;  %vm366_vm5 = vcmask 7168  }
  0x4b   :  { %392 = vmatpush3.msk.msra.mxu0 %vm85_vm1, %v80_v2  ;;  %v415_v6 = vpack.c.bf16 %v79_v5, %v78_v4  ;;  %v273_v8 = vld [vmem:[%s657_s5] sm:$0xff]  ;;  %v275_v11 = vld [vmem:[%s657_s5 + $0x10] sm:$0xff]  ;;  %v276_v12 = vld [vmem:[%s657_s5 + $0x18] sm:$0xff]  ;;  %v263_v36 = vshrl.u32 %v262_v35, 7 }
  0x4c   :  { %394 = vmatmul.mubr.msk.f32.vlgmr.msra.gmra.mrb[0].mxu0 %vm81_vm2, %v77_v3  ;;  %414 = vmatprep.subr.bf16.mxu0 %v538_v1  ;;  %v418_v10 = vpack.c.bf16 %v274_v9, %v273_v8  ;;  %v421_v13 = vpack.c.bf16 %v276_v12, %v275_v11  ;;  %v233_v37 = vld [vmem:[#allocation8] sm:$0x1]  ;;  %v234_v41 = vld [vmem:[#allocation8 + $0x1] sm:$0x1]  ;;  %v378_v49 = vld [vmem:[#allocation8 + $0x2] ss:$0 sm:$0xff] }
  0x4d   :  { %400 = vmatprep.mubr.msk.f32.mxu0 %vm537_vm0, %v536_v0  ;;  %416 = vmatpush3.bf16.msra.mxu0 %v415_v6  ;;  %v264_v38 = vsub.s32 0, %v263_v36  ;;  %v380_v53 = vld [vmem:[#allocation8 + $0x3] ss:$0 sm:$0xff] }
  0x4e   :  { %419 = vmatpush3.bf16.msra.mxu1 %v418_v10 }
  0x4f   :  { %420 = vmatprep.subr.bf16.mxu1 %v538_v1 }
  0x52   :  { %422 = vmatpush3.bf16.msra.mxu1 %v421_v13 }
  0x54   :  { %401 = vmatmul.mubr.msk.f32.vlgmr.msra.gmra.mrb[0].mxu0 %vm159_vm3, %v76_v7 }
 0x127   :  { %v229_v14 = vpop.f32.mrb[0].mxu0 }
 0x128   :  { %v238_v15 = vsel %vm237_vm4, %v229_v14, 0.0  ;;  %v402_v16 = vpop.f32.mrb[1].mxu0 }
 0x129   :  { %v239_v17 = vrot.slane %v238_v15, 4 }
 0x12b   :  { %v240_v18 = vadd.f32 %v239_v17, %v238_v15 }
 0x12d   :  { %v241_v19 = vrot.slane %v240_v18, 2 }
 0x12f   :  { %v242_v20 = vadd.f32 %v241_v19, %v240_v18 }
 0x131   :  { %v243_v21 = vrot.slane %v242_v20, 1 }
 0x133   :  { %v244_v22 = vadd.f32 %v243_v21, %v242_v20 }
 0x135   :  { %v246_v23 = vmul.f32 0.125, %v244_v22 }
 0x137   :  { %v247_v24 = vsub.f32 %v229_v14, %v246_v23 }
 0x139   :  { %v248_v25 = vmul.f32 %v247_v24, %v247_v24 }
 0x13b   :  { %v249_v26 = vsel %vm237_vm4, %v248_v25, 0.0 }
 0x13c   :  { %v250_v27 = vrot.slane %v249_v26, 4 }
 0x13e   :  { %v251_v28 = vadd.f32 %v250_v27, %v249_v26 }
 0x140   :  { %v252_v29 = vrot.slane %v251_v28, 2 }
 0x142   :  { %v253_v30 = vadd.f32 %v252_v29, %v251_v28 }
 0x144   :  { %v254_v31 = vrot.slane %v253_v30, 1 }
 0x146   :  { %v255_v32 = vadd.f32 %v254_v31, %v253_v30 }
 0x148   :  { %v256_v33 = vmul.f32 0.125, %v255_v32 }
 0x14a   :  { %v257_v34 = vadd.f32 1e-05, %v256_v33 }
 0x14c   :  { %434 = vrsqrt.f32 %v257_v34 }
 0x156   :  { %v435_v39 = vpop.eup %434 }
 0x157   :  { %v259_v40 = vmul.f32 %v435_v39, %v233_v37 }
 0x159   :  { %v260_v42 = vmul.f32 %v259_v40, %v246_v23  ;;  %v265_v43 = vrot.slane %v259_v40, %v264_v38 }
 0x15b   :  { %v261_v44 = vsub.f32 %v234_v41, %v260_v42  ;;  %v266_v45 = vmul.f32 %v265_v43, %v229_v14 }
 0x15d   :  { %v270_v46 = vrot.slane %v261_v44, %v264_v38 }
 0x15f   :  { %v271_v47 = vadd.f32 %v270_v46, %v266_v45 }
 0x161   :  { %v272_v48 = vmax.f32 %v271_v47, 0.0 }
 0x163   :  { %412 = vmatmul.mubr.msk.f32.vlgmr.msra.gmra.mrb[0].mxu1 %vm237_vm4, %v272_v48 }
 0x236   :  { %v350_v50 = vpop.f32.mrb[0].mxu1 }
 0x237   :  { %v351_v51 = vadd.f32 %v378_v49, %v350_v50  ;;  %v413_v52 = vpop.f32.mrb[1].mxu1 }
 0x239   :  { %v354_v54 = vmax.f32 %v351_v51, 0.0 }
 0x23b   :  { %v359_v55 = vmul.f32 %v380_v53, %v354_v54 }
 0x23d   :  { %v360_v56 = vsel %vm237_vm4, %v359_v55, 0.0 }
 0x23e   :  { %361 = vadd.xlane.f32.xlu0 %v360_v56 }
 0x2cb   :  { %v362_v58 = vpop.xlane.xlu0 %361 }
 0x2cc   :  { %v365_v59 = vadd.f32 %v364_v57, %v362_v58 }
 0x2ce   :  { %367 = vst.msk [vmem:[%s659_s7] sm:$0xff] %vm366_vm5, %v365_v59 }
 0x2cf   :  { %372 = vsyncpa [#allocation4], 1 }
 0x2d0   :  { %373 = vsyncpa [#allocation6], 1 }
 0x2d1   :  { %374 = vsyncpa [#allocation9], 1 }

</bundles_post_ra>
